<compile_context>
chip_gen: v6e
topology: v6e:2x2x1
jax: 0.10.0
libtpu: 0.0.40
codegen_flags: <defaults>
</compile_context>

<pallas_src>
import jax
import jax.numpy as jnp
from jax.experimental import pallas as pl
from jax.experimental.pallas import tpu as pltpu


def _exp_kernel(kappa_ref, x_ref, o_ref):
    # exp(kappa * x); compute in f32 in-register, store in the wire dtype.
    kappa = kappa_ref[0]
    xf = x_ref[...].astype(jnp.float32)
    o_ref[...] = jnp.exp(kappa * xf).astype(o_ref.dtype)


def _exp_binary_kernel(kappa_ref, x_ref, o_ref):
    # exp(kappa * x) * float(x > 0.55) -- compare->cast->multiply so overflow
    # semantics (inf * 0 == NaN) match PyTorch.
    kappa = kappa_ref[0]
    xf = x_ref[...].astype(jnp.float32)
    mask = (xf > jnp.float32(0.55)).astype(jnp.float32)
    o_ref[...] = (jnp.exp(kappa * xf) * mask).astype(o_ref.dtype)


_TILE_BYTES = 4 << 20           # ~4 MiB per tile buffer
_VMEM_LIMIT_BYTES = 32 << 20    # 2x(in)+2x(out) tiles = 16 MiB resident; 32 MiB
                                # scoped limit is legal on v5e/v6e (128 MiB phys)
                                # and v7x (64 MiB phys) alike.
_SMALL_INPUT_BYTES = 256 << 10  # below this, XLA fusion beats a pallas launch


def _exp_jnp(kappa, x, binary, out_dtype):
    """Reference / fallback path (XLA-fused)."""
    xf = x.astype(jnp.float32)
    y = jnp.exp(kappa * xf)
    if binary:
        y = y * (xf > jnp.float32(0.55)).astype(jnp.float32)
    return y.astype(out_dtype)


def _pick_lanes(n):
    # Widest lane width (multiple of 128) that divides n exactly.
    for cand in (1024, 512, 256, 128):
        if n % cand == 0:
            return cand
    return 128  # unreachable: n is always a multiple of 128 here


def _pick_tile_rows(rows, lanes, itemsize, sub_mult):
    """Rows per block: ~_TILE_BYTES worth, a multiple of sub_mult, at least two
    grid blocks when the data allows (feeds both v7x TensorCores), and prefer
    an exact divisor of `rows` so no grid step is a partial/masked block."""
    target = _TILE_BYTES // (lanes * itemsize)
    target = max(sub_mult, (target // sub_mult) * sub_mult)
    if rows > sub_mult:
        half = max(sub_mult, (pl.cdiv(rows, 2) // sub_mult) * sub_mult)
        target = min(target, half)
    if target >= rows:
        return rows  # single full-extent block (tiny leftover cases)
    # Snap down to a divisor of rows if one exists nearby; otherwise keep the
    # target and rely on Pallas masking the partial edge block.
    t = target
    floor = max(sub_mult, target // 2)
    while t >= floor:
        if rows % t == 0:
            return t
        t -= sub_mult
    return target


class ExpLayer:
    """JAX/Pallas port of the PyTorch ExpLayer module."""

    def __init__(self, vMF_kappa: float):
        # nn.Parameter(torch.Tensor([vMF_kappa])) -> shape (1,) float32
        self.vMF_kappa = jnp.asarray([vMF_kappa], dtype=jnp.float32)

    def __call__(self, x, binary: bool = False):
        orig_shape = x.shape
        orig_dtype = x.dtype
        total = x.size
        itemsize = jnp.dtype(orig_dtype).itemsize

        # Small-input fallback: pallas_call launch + single-tile pipeline
        # overhead dominates tiny tensors; let XLA fuse the elementwise chain.
        if total * itemsize < _SMALL_INPUT_BYTES:
            return _exp_jnp(self.vMF_kappa[0], x, binary, orig_dtype)

        x_flat = x.reshape(-1)

        # Ragged flat size: run the kernel on the 128-aligned bulk and finish
        # the (<128-element) tail with plain jnp -- no full-array pad pass and
        # no output-slice pass.
        bulk = (total // 128) * 128
        tail = total - bulk
        x_bulk = x_flat[:bulk] if tail else x_flat

        lanes = _pick_lanes(bulk)
        rows = bulk // lanes
        x2d = x_bulk.reshape(rows, lanes)

        # Sub-32-bit dtypes pack 2/4 rows per sublane; keep the sublane tile a
        # multiple of the packing factor so edge tiles avoid relayout.
        sub_mult = 8 * max(1, 4 // itemsize)
        tile_rows = _pick_tile_rows(rows, lanes, itemsize, sub_mult)
        grid = (pl.cdiv(rows, tile_rows),)

        kernel = _exp_binary_kernel if binary else _exp_kernel
        flops_per_elem = 4 if binary else 1  # mul (+ cmp/cast/mul for binary)

        out2d = pl.pallas_call(
            kernel,
            out_shape=jax.ShapeDtypeStruct((rows, lanes), orig_dtype),
            grid_spec=pl.GridSpec(
                grid=grid,
                in_specs=[
                    pl.BlockSpec(memory_space=pltpu.SMEM),               # kappa
                    pl.BlockSpec((tile_rows, lanes), lambda i: (i, 0)),  # x tile
                ],
                out_specs=pl.BlockSpec((tile_rows, lanes), lambda i: (i, 0)),
            ),
            compiler_params=pltpu.CompilerParams(
                # Row-tile axis is fully independent -> shard across both
                # TensorCores on v7x; neutral on single-TC v5e/v6e.
                # TODO(synk): try pltpu.CORE_PARALLEL here if xprof shows one
                # v7x TC idle under plain "parallel".
                dimension_semantics=("parallel",),
                vmem_limit_bytes=_VMEM_LIMIT_BYTES,
            ),
            cost_estimate=pl.CostEstimate(
                flops=flops_per_elem * bulk,
                transcendentals=bulk,
                bytes_accessed=2 * bulk * itemsize,
            ),
        )(self.vMF_kappa, x2d)

        out_flat = out2d.reshape(-1)
        if tail:
            tail_out = _exp_jnp(self.vMF_kappa[0], x_flat[bulk:], binary,
                                orig_dtype)
            out_flat = jnp.concatenate([out_flat, tail_out])
        return out_flat.reshape(orig_shape)


if __name__ == "__main__":
    kappa = 30.0
    layer = ExpLayer(vMF_kappa=kappa)
    k0, k1, k2 = jax.random.split(jax.random.PRNGKey(0), 3)

    def check(x):
        out = jax.block_until_ready(layer(x, binary=False))
        ref = jnp.exp(kappa * x)
        assert jnp.allclose(out, ref, rtol=1e-5, atol=1e-5), "non-binary mismatch"
        out_b = jax.block_until_ready(layer(x, binary=True))
        ref_b = jnp.exp(kappa * x) * (x > 0.55).astype(jnp.float32)
        assert jnp.allclose(out_b, ref_b, rtol=1e-5, atol=1e-5), "binary mismatch"

    # 1) Module-shaped small NCHW feature map -> small-input (fused jnp) path.
    check(jax.random.uniform(k0, (2, 4, 16, 16), dtype=jnp.float32))

    # 2) Larger feature map (512 KiB) -> Pallas streaming path, 2 grid blocks.
    check(jax.random.uniform(k1, (2, 8, 64, 128), dtype=jnp.float32))

    # 3) Ragged flat size (~258 KiB, not a multiple of 128) -> Pallas bulk +
    #    jnp tail path, including a partial (masked) edge block.
    check(jax.random.uniform(k2, (1, 1, 257, 257), dtype=jnp.float32))

    print("KERNEL_OK")
</pallas_src>

<mosaic_0001>
module attributes {stable_mosaic.version = 11 : i64} {
  func.func @_exp_kernel(%arg0: i32, %arg1: memref<1xf32, #tpu.memory_space<smem>>, %arg2: memref<64x1024xf32, #tpu.memory_space<vmem>>, %arg3: memref<64x1024xf32, #tpu.memory_space<vmem>>) attributes {dimension_semantics = [#tpu.dimension_semantics<parallel>], iteration_bounds = array<i64: 2>, scalar_prefetch = 0 : i64, scratch_operands = 0 : i64, tpu.core_type = #tpu.core_type<tc>, window_params = [{transform_indices = @transform_0, window_bounds = array<i64: 1>}, {transform_indices = @transform_1, window_bounds = array<i64: 64, 1024>}, {transform_indices = @transform_2, window_bounds = array<i64: 64, 1024>}]} {
    %c0 = arith.constant 0 : index
    %0 = memref.load %arg1[%c0] : memref<1xf32, #tpu.memory_space<smem>>
    %c0_0 = arith.constant 0 : index
    %c0_1 = arith.constant 0 : index
    %1 = vector.load %arg2[%c0_0, %c0_1] : memref<64x1024xf32, #tpu.memory_space<vmem>>, vector<64x1024xf32>
    %2 = vector.broadcast %0 : f32 to vector<64x1024xf32>
    %3 = arith.mulf %2, %1 : vector<64x1024xf32>
    %4 = math.exp %3 : vector<64x1024xf32>
    %c0_2 = arith.constant 0 : index
    %c0_3 = arith.constant 0 : index
    %5 = vector.load %arg3[%c0_2, %c0_3] : memref<64x1024xf32, #tpu.memory_space<vmem>>, vector<64x1024xf32>
    tpu.vector_store %arg3[%c0_2, %c0_3], %4 {strides = array<i32>} : memref<64x1024xf32, #tpu.memory_space<vmem>>, vector<64x1024xf32>,
    return
  }
  func.func @transform_0(%arg0: i32) -> i32 {
    %c0_i32 = arith.constant 0 : i32
    %c0_i32_0 = arith.constant 0 : i32
    return %c0_i32 : i32
  }
  func.func @transform_1(%arg0: i32) -> (i32, i32) {
    %c0_i32 = arith.constant 0 : i32
    %c0_i32_0 = arith.constant 0 : i32
    return %arg0, %c0_i32 : i32, i32
  }
  func.func @transform_2(%arg0: i32) -> (i32, i32) {
    %c0_i32 = arith.constant 0 : i32
    %c0_i32_0 = arith.constant 0 : i32
    return %arg0, %c0_i32 : i32, i32
  }
}

</mosaic_0001>

<bundles_post_ra>
// kernel: tpu_custom_call.1
= control target key start
LH: loop header
LB: loop body
LE: loop exit
PB: predicated region body
PF: predicated region fallthrough
CT: control target
= control target key end

     0   :  { %s1249_s0 = inlined_call_operand.<no memory space> [shape: f32[1], index: 0, kind: input, shape index: {}]   ;;  %s1250_s1 = inlined_call_operand.hbm [shape: f32[128,1024], index: 1, kind: input, shape index: {}]   ;;  %s1251_s2 = inlined_call_operand.hbm [shape: f32[128,1024], index: 2, kind: output, shape index: {}]  }
   0x1   :  { %7 = sst [smem:[#allocation2]] %s1249_s0 }
   0x2   :  { %8 = vsyncpa [#allocation4], 0 }
   0x3   :  { %10 = vsyncpa [#allocation4 + $0x1], 0 }
   0x4   :  { %11 = vsyncpa [#allocation5], 0 }
   0x5   :  { %13 = vsyncpa [#allocation5 + $0x1], 0  ;;  %s892_s11 = smov 0   ;;  %s894_s12 = smov 0  }
   0x6   :  { %s896_s13 = smov 0   ;;  %s898_s14 = smov 0  }
   0x7 LB: > { %s913_s0 = sadd.s32 4294967295, %s866_s14   ;;  %s576_s15 = sadd.s32 4294967294, %s866_s14   ;;  %s866_s14 = sphi %s898_s14, %s1266_s14   ;;  %s862_s13 = sphi %s896_s13, %s1265_s13   ;;  %s858_s12 = sphi %s894_s12, %s1264_s12   ;;  %s854_s11 = sphi %s892_s11, %s1263_s11  }
   0x8   : > { %s917_s16 = sadd.s32 1, %s866_s14   ;;  %s47_s17 = sadd.s32 1, %s862_s13 }
   0x9   : > { %s44_s18 = ssub.s32 %s866_s14, %s917_s16  ;;  %p54_p0 = scmp.ne.s32.totalorder %s862_s13, %s858_s12 }
   0xa   : > { %p45_p1 = scmp.eq.s32.totalorder %s44_s18, 0  ;;  %p55_p2 = scmp.eq.s32.totalorder %s866_s14, 0 }
   0xb   : > { %p60_p3 = scmp.ne.s32.totalorder %s858_s12, %s854_s11  ;;  %p61_p4 = scmp.eq.s32.totalorder %s913_s0, 0 }
   0xc   : > { %s929_s19 = scalar_select %p45_p1, %s862_s13, %s47_s17  }
   0xd   : > { %p931_p5 = por %p55_p2, %p54_p0  ;;  %p935_p6 = por %p61_p4, %p60_p3 }
   0xe   : > { %p84_p7 = scmp.eq.s32.totalorder %s913_s0, 1  ;;  %p90_p8 = scmp.eq.s32.totalorder %s576_s15, 1 }
   0xf   : > { %s1255_s21 = scalar_select %p935_p6, 1, 0 }
  0x10   : > { %p608_p10 = scmp.lt.s32.totalorder %s866_s14, 2  ;;  %p942_p11 = por %p84_p7, %p54_p0 }
  0x11   : > { %p946_p12 = por %p90_p8, %p60_p3  ;;  %s113_s24 = sand.u32 1, %s862_s13  }
  0x12   : > { %s1256_s22 = scalar_select %p942_p11, 1, 0 }
  0x13   : > { %s1257_s23 = scalar_select %p946_p12, 1, 0 }
  0x14   : > { %s593_s25 = sshll.u32 %s866_s14, 13  ;;  %s579_s26 = sshll.u32 %s113_s24, 9 }
  0x15   : > { %s955_s29 = scalar_lea.hbm %s1250_s1, %s593_s25  ;;  %s117_s30 = scalar_lea.vmem [#allocation3], %s579_s26 }
  0x16   : > { %s125_s3 = sshll.u32 %s117_s30, 4  ;;  %p959_p13 = pnand %p608_p10, %p931_p5  ;;  %s963_s3 = int_to_ptr.vmem [resolvable:$true] %s125_s3 }
  0x17   : > { %s965_s5 = scalar_lea.sflag [#allocation4], %s113_s24  ;;  %s774_s6 = scalar_lea.hbm %s955_s29, 8192 }
  0x18   : > { %p775_p0 = scmp.ne.s32.totalorder %s955_s29, %s774_s6  ;;  %p776_p1 = pneg %p959_p13 }
  0x19   : > { %s779_s9 = scalar_lea.hbm %s1250_s1, 16384  ;;  %p780_p4 = scmp.lt.s32.totalorder %s955_s29, %s1250_s1 }
  0x1a   : > { %p777_p2 = pnand %p776_p1, %p775_p0  ;;  %p781_p5 = scmp.lt.s32.totalorder %s779_s9, %s774_s6 }
  0x1c   : > { %p778_p3 = pneg %p777_p2  ;;  %p782_p7 = por %p781_p5, %p780_p4 }
  0x1e   : > { %p783_p8 = pnand %p782_p7, %p778_p3 }
  0x20   : > { %786 = shalt.err (!%p783_p8)
}
  0x21   : > { %s787_s17 = scalar_lea.vmem %s963_s3, 8192  ;;  %s868_s18 = smov [#allocation3]  }
  0x22   : > { %p788_p10 = scmp.ne.s32.totalorder %s963_s3, %s787_s17  ;;  %s792_s20 = sshll.u32 %s868_s18, 4  ;;  %s793_s20 = int_to_ptr.vmem [resolvable:$false] %s792_s20 }
  0x23   : > { %s794_s24 = scalar_lea.vmem %s793_s20, 16384  ;;  %p795_p2 = scmp.lt.s32.totalorder %s963_s3, %s793_s20 }
  0x24   : > { %p790_p9 = pnand %p788_p10, %p776_p1  ;;  %p796_p12 = scmp.lt.s32.totalorder %s794_s24, %s787_s17 }
  0x26   : > { %p791_p0 = pneg %p790_p9  ;;  %p797_p11 = por %p796_p12, %p795_p2 }
  0x28   : > { %p798_p6 = pnand %p797_p11, %p791_p0 }
  0x2a   : > { %801 = shalt.err (!%p798_p6)
}
  0x2b   : > { %s869_s25 = smov 1024   ;;  %s870_s26 = smov 64  }
  0x2c   : > { %603 = dma.hbm_to_vmem [thread:$0]  (!%p959_p13), %s955_s29, 8192, %s963_s3, %s965_s5, %s869_s25, %s869_s25, %s870_s26  }
  0x2d   : > { %p583_p9 = scmp.ge.s32.totalorder %s866_s14, 1  ;;  %p133_p1 = scmp.lt.s32.totalorder %s866_s14, 3 }
  0x2f   : > { %p134_p3 = pnand %p583_p9, %p133_p1 }
  0x30   : > { %s989_s27 = sand.u32 (!%p134_p3), 1, %s858_s12   ;;  %p1259_p6 = scmp.ne.s32.totalorder (!%p134_p3), %s1255_s21, 0 }
  0x31   : > { %137 = sbr.rel (%p134_p3) target bundleno = 157 (0x9d), region = 28  ;;  %s584_s28 = sshll.u32 (!%p134_p3), %s989_s27, 9 }
  0x32   : > { %s140_s30 = scalar_lea.sflag (!%p134_p3), [#allocation4], %s989_s27  ;;  %s995_s6 = scalar_lea.vmem (!%p134_p3), [#allocation3], %s584_s28 }
  0x36   : > { %845 = dma.done.wait (%p1259_p6), %s140_s30, 8192  }
  0x37   : > { %847 = vsyncadd (%p1259_p6), %s140_s30, 4294959104  ;;  %s166_s29 = sld [smem:[#allocation2]]  ;;  %v167_v0 = vld [vmem:[%s995_s6] sm:$0xff]  ;;  %v168_v2 = vld [vmem:[%s995_s6 + $0x8] sm:$0xff]  ;;  %s1052_s21 = scalar_lea.vmem [#allocation6], %s584_s28 }
  0x38   : > { %v169_v3 = vld [vmem:[%s995_s6 + $0x10] sm:$0xff]  ;;  %v170_v7 = vld [vmem:[%s995_s6 + $0x18] sm:$0xff]  ;;  %v171_v8 = vld [vmem:[%s995_s6 + $0x20] sm:$0xff]  ;;  %s595_s3 = sshll.u32 %s913_s0, 13  ;;  %s503_s4 = sshll.u32 %s1052_s21, 4  ;;  %s1203_s4 = int_to_ptr.vmem [resolvable:$true] %s503_s4 }
  0x39   : > { %v172_v9 = vld [vmem:[%s995_s6 + $0x28] sm:$0xff]  ;;  %v173_v13 = vld [vmem:[%s995_s6 + $0x30] sm:$0xff]  ;;  %v174_v14 = vld [vmem:[%s995_s6 + $0x38] sm:$0xff]  ;;  %s1201_s8 = scalar_lea.hbm %s1251_s2, %s595_s3  ;;  %s489_s0 = scalar_lea.sflag [#allocation5], %s989_s27 }
  0x3a   : > { %v175_v15 = vld [vmem:[%s995_s6 + $0x40] sm:$0xff]  ;;  %v176_v24 = vld [vmem:[%s995_s6 + $0x48] sm:$0xff]  ;;  %v177_v25 = vld [vmem:[%s995_s6 + $0x50] sm:$0xff]  ;;  %s802_s9 = scalar_lea.vmem %s1203_s4, 8192  ;;  %p1260_p12 = scmp.ne.s32.totalorder %s1256_s22, 0 }
  0x3b   : > { %v178_v26 = vld [vmem:[%s995_s6 + $0x58] sm:$0xff]  ;;  %v179_v29 = vld [vmem:[%s995_s6 + $0x60] sm:$0xff]  ;;  %v180_v32 = vld [vmem:[%s995_s6 + $0x68] sm:$0xff]  ;;  %p803_p11 = scmp.ne.s32.totalorder %s1203_s4, %s802_s9  ;;  %s871_s10 = smov [#allocation6]  }
  0x3c   : > { %v181_v35 = vld [vmem:[%s995_s6 + $0x70] sm:$0xff]  ;;  %v182_v38 = vld [vmem:[%s995_s6 + $0x78] sm:$0xff]  ;;  %v183_v41 = vld [vmem:[%s995_s6 + $0x80] sm:$0xff]  ;;  %s806_s15 = sshll.u32 %s871_s10, 4  ;;  %s807_s15 = int_to_ptr.vmem [resolvable:$false] %s806_s15 }
  0x3d   : > { %v1002_v1 = vstv %s166_s29  ;;  %v184_v44 = vld [vmem:[%s995_s6 + $0x88] sm:$0xff]  ;;  %v185_v47 = vld [vmem:[%s995_s6 + $0x90] sm:$0xff]  ;;  %v186_v50 = vld [vmem:[%s995_s6 + $0x98] sm:$0xff]  ;;  %p804_p13 = pnand %p803_p11, %p1260_p12  ;;  %s808_s17 = scalar_lea.vmem %s807_s15, 16384 }
  0x3e   : > { %v232_v4 = vmul.f32 %v1002_v1, %v167_v0  ;;  %v233_v5 = vmul.f32 %v1002_v1, %v168_v2  ;;  %v234_v6 = vmul.f32 %v1002_v1, %v169_v3  ;;  %v235_v10 = vmul.f32 %v1002_v1, %v170_v7  ;;  %v187_v53 = vld [vmem:[%s995_s6 + $0xa0] sm:$0xff]  ;;  %v188_v56 = vld [vmem:[%s995_s6 + $0xa8] sm:$0xff]  ;;  %v189_v59 = vld [vmem:[%s995_s6 + $0xb0] sm:$0xff]  ;;  %p809_p5 = scmp.lt.s32.totalorder %s1203_s4, %s807_s15  ;;  %p810_p7 = scmp.lt.s32.totalorder %s808_s17, %s802_s9 }
  0x3f   : > { %v236_v11 = vmul.f32 %v1002_v1, %v171_v8  ;;  %v237_v12 = vmul.f32 %v1002_v1, %v172_v9  ;;  %v238_v19 = vmul.f32 %v1002_v1, %v173_v13  ;;  %v239_v21 = vmul.f32 %v1002_v1, %v174_v14  ;;  %v190_v62 = vld [vmem:[%s995_s6 + $0xb8] sm:$0xff]  ;;  %v191_v3 = vld [vmem:[%s995_s6 + $0xc0] sm:$0xff]  ;;  %v192_v7 = vld [vmem:[%s995_s6 + $0xc8] sm:$0xff]  ;;  %p805_p4 = pneg %p804_p13 }
  0x40   : > { %v296_v16 = vmul.f32 1.442695, %v232_v4  ;;  %v298_v17 = vmul.f32 1.442695, %v233_v5  ;;  %v300_v18 = vmul.f32 1.442695, %v234_v6  ;;  %v240_v23 = vmul.f32 %v1002_v1, %v175_v15  ;;  %p811_p8 = por %p810_p7, %p809_p5 }
  0x41   : > { %v302_v20 = vmul.f32 1.442695, %v235_v10  ;;  %v304_v22 = vmul.f32 1.442695, %v236_v11  ;;  %v306_v27 = vmul.f32 1.442695, %v237_v12  ;;  %v241_v28 = vmul.f32 %v1002_v1, %v176_v24 }
  0x42   : > { %646 = vpow2.f32 %v296_v16  ;;  %v308_v30 = vmul.f32 1.442695, %v238_v19  ;;  %v242_v31 = vmul.f32 %v1002_v1, %v177_v25  ;;  %v310_v33 = vmul.f32 1.442695, %v239_v21  ;;  %v193_v11 = vld [vmem:[%s995_s6 + $0xd0] sm:$0xff]  ;;  %v194_v15 = vld [vmem:[%s995_s6 + $0xd8] sm:$0xff]  ;;  %p812_p10 = pnand %p811_p8, %p805_p4 }
  0x43   : > { %648 = vpow2.f32 %v298_v17  ;;  %v243_v34 = vmul.f32 %v1002_v1, %v178_v26  ;;  %v312_v36 = vmul.f32 1.442695, %v240_v23  ;;  %v244_v37 = vmul.f32 %v1002_v1, %v179_v29  ;;  %v195_v19 = vld [vmem:[%s995_s6 + $0xe0] sm:$0xff]  ;;  %v196_v23 = vld [vmem:[%s995_s6 + $0xe8] sm:$0xff] }
  0x44   : > { %650 = vpow2.f32 %v300_v18  ;;  %v314_v39 = vmul.f32 1.442695, %v241_v28  ;;  %v245_v40 = vmul.f32 %v1002_v1, %v180_v32  ;;  %v316_v42 = vmul.f32 1.442695, %v242_v31  ;;  %v198_v31 = vld [vmem:[%s995_s6 + $0xf8] sm:$0xff] }
  0x45   : > { %652 = vpow2.f32 %v302_v20  ;;  %v246_v43 = vmul.f32 %v1002_v1, %v181_v35  ;;  %v318_v45 = vmul.f32 1.442695, %v243_v34  ;;  %v247_v46 = vmul.f32 %v1002_v1, %v182_v38  ;;  %v199_v35 = vld [vmem:[%s995_s6 + $0x100] sm:$0xff] }
  0x46   : > { %654 = vpow2.f32 %v304_v22  ;;  %v320_v48 = vmul.f32 1.442695, %v244_v37  ;;  %v248_v49 = vmul.f32 %v1002_v1, %v183_v41  ;;  %v322_v51 = vmul.f32 1.442695, %v245_v40 }
  0x47   : > { %656 = vpow2.f32 %v306_v27  ;;  %v249_v52 = vmul.f32 %v1002_v1, %v184_v44  ;;  %v324_v54 = vmul.f32 1.442695, %v246_v43  ;;  %v250_v55 = vmul.f32 %v1002_v1, %v185_v47  ;;  %v197_v27 = vld [vmem:[%s995_s6 + $0xf0] sm:$0xff]  ;;  %v202_v47 = vld [vmem:[%s995_s6 + $0x118] sm:$0xff] }
  0x48   : > { %658 = vpow2.f32 %v308_v30  ;;  %v326_v57 = vmul.f32 1.442695, %v247_v46  ;;  %v251_v58 = vmul.f32 %v1002_v1, %v186_v50  ;;  %v328_v60 = vmul.f32 1.442695, %v248_v49  ;;  %v201_v43 = vld [vmem:[%s995_s6 + $0x110] sm:$0xff] }
  0x49   : > { %660 = vpow2.f32 %v310_v33  ;;  %v252_v61 = vmul.f32 %v1002_v1, %v187_v53  ;;  %v330_v0 = vmul.f32 1.442695, %v249_v52  ;;  %v253_v2 = vmul.f32 %v1002_v1, %v188_v56 }
  0x4a   : > { %662 = vpow2.f32 %v312_v36  ;;  %v332_v5 = vmul.f32 1.442695, %v250_v55  ;;  %v254_v6 = vmul.f32 %v1002_v1, %v189_v59  ;;  %v334_v9 = vmul.f32 1.442695, %v251_v58  ;;  %v204_v55 = vld [vmem:[%s995_s6 + $0x128] sm:$0xff]  ;;  %v205_v59 = vld [vmem:[%s995_s6 + $0x130] sm:$0xff] }
  0x4b   : > { %664 = vpow2.f32 %v314_v39  ;;  %v255_v10 = vmul.f32 %v1002_v1, %v190_v62  ;;  %v336_v13 = vmul.f32 1.442695, %v252_v61  ;;  %v256_v14 = vmul.f32 %v1002_v1, %v191_v3  ;;  %v200_v39 = vld [vmem:[%s995_s6 + $0x108] sm:$0xff] }
  0x4c   : > { %666 = vpow2.f32 %v316_v42  ;;  %v338_v17 = vmul.f32 1.442695, %v253_v2  ;;  %v257_v18 = vmul.f32 %v1002_v1, %v192_v7  ;;  %v340_v21 = vmul.f32 1.442695, %v254_v6 }
  0x4d   : > { %668 = vpow2.f32 %v318_v45  ;;  %v258_v22 = vmul.f32 %v1002_v1, %v193_v11  ;;  %v342_v25 = vmul.f32 1.442695, %v255_v10  ;;  %v259_v26 = vmul.f32 %v1002_v1, %v194_v15 }
  0x4e   : > { %670 = vpow2.f32 %v320_v48  ;;  %v344_v29 = vmul.f32 1.442695, %v256_v14  ;;  %v260_v30 = vmul.f32 %v1002_v1, %v195_v19  ;;  %v346_v33 = vmul.f32 1.442695, %v257_v18 }
  0x4f   : > { %v647_v63 = vpop.eup %646  ;;  %672 = vpow2.f32 %v322_v51  ;;  %v261_v34 = vmul.f32 %v1002_v1, %v196_v23  ;;  %v348_v37 = vmul.f32 1.442695, %v258_v22  ;;  %v262_v38 = vmul.f32 %v1002_v1, %v197_v27  ;;  %v203_v51 = vld [vmem:[%s995_s6 + $0x120] sm:$0xff] }
  0x50   : > { %v649_v4 = vpop.eup %648  ;;  %424 = vst [vmem:[%s1052_s21] sm:$0xff] %v647_v63  ;;  %674 = vpow2.f32 %v324_v54  ;;  %v350_v41 = vmul.f32 1.442695, %v259_v26  ;;  %v263_v42 = vmul.f32 %v1002_v1, %v198_v31  ;;  %v352_v45 = vmul.f32 1.442695, %v260_v30  ;;  %v206_v63 = vld [vmem:[%s995_s6 + $0x138] sm:$0xff] }
  0x51   : > { %v651_v8 = vpop.eup %650  ;;  %425 = vst [vmem:[%s1052_s21 + $0x8] sm:$0xff] %v649_v4  ;;  %676 = vpow2.f32 %v326_v57  ;;  %v264_v46 = vmul.f32 %v1002_v1, %v199_v35  ;;  %v354_v49 = vmul.f32 1.442695, %v261_v34  ;;  %v265_v50 = vmul.f32 %v1002_v1, %v200_v39  ;;  %v207_v4 = vld [vmem:[%s995_s6 + $0x140] sm:$0xff] }
  0x52   : > { %v653_v12 = vpop.eup %652  ;;  %426 = vst [vmem:[%s1052_s21 + $0x10] sm:$0xff] %v651_v8  ;;  %678 = vpow2.f32 %v328_v60  ;;  %v356_v53 = vmul.f32 1.442695, %v262_v38  ;;  %v266_v54 = vmul.f32 %v1002_v1, %v201_v43  ;;  %v358_v57 = vmul.f32 1.442695, %v263_v42  ;;  %v208_v8 = vld [vmem:[%s995_s6 + $0x148] sm:$0xff] }
  0x53   : > { %v655_v16 = vpop.eup %654  ;;  %427 = vst [vmem:[%s1052_s21 + $0x18] sm:$0xff] %v653_v12  ;;  %680 = vpow2.f32 %v330_v0  ;;  %v267_v58 = vmul.f32 %v1002_v1, %v202_v47  ;;  %v360_v61 = vmul.f32 1.442695, %v264_v46  ;;  %v268_v62 = vmul.f32 %v1002_v1, %v203_v51  ;;  %v209_v12 = vld [vmem:[%s995_s6 + $0x150] sm:$0xff] }
  0x54   : > { %v657_v20 = vpop.eup %656  ;;  %428 = vst [vmem:[%s1052_s21 + $0x20] sm:$0xff] %v655_v16  ;;  %682 = vpow2.f32 %v332_v5  ;;  %v362_v2 = vmul.f32 1.442695, %v265_v50  ;;  %v269_v3 = vmul.f32 %v1002_v1, %v204_v55  ;;  %v364_v6 = vmul.f32 1.442695, %v266_v54  ;;  %v210_v16 = vld [vmem:[%s995_s6 + $0x158] sm:$0xff] }
  0x55   : > { %v659_v24 = vpop.eup %658  ;;  %429 = vst [vmem:[%s1052_s21 + $0x28] sm:$0xff] %v657_v20  ;;  %684 = vpow2.f32 %v334_v9  ;;  %v270_v7 = vmul.f32 %v1002_v1, %v205_v59  ;;  %v366_v10 = vmul.f32 1.442695, %v267_v58  ;;  %v271_v11 = vmul.f32 %v1002_v1, %v206_v63  ;;  %v211_v20 = vld [vmem:[%s995_s6 + $0x160] sm:$0xff] }
  0x56   : > { %v661_v28 = vpop.eup %660  ;;  %430 = vst [vmem:[%s1052_s21 + $0x30] sm:$0xff] %v659_v24  ;;  %686 = vpow2.f32 %v336_v13  ;;  %v368_v14 = vmul.f32 1.442695, %v268_v62  ;;  %v272_v15 = vmul.f32 %v1002_v1, %v207_v4  ;;  %v370_v18 = vmul.f32 1.442695, %v269_v3  ;;  %v212_v24 = vld [vmem:[%s995_s6 + $0x168] sm:$0xff] }
  0x57   : > { %v663_v32 = vpop.eup %662  ;;  %431 = vst [vmem:[%s1052_s21 + $0x38] sm:$0xff] %v661_v28  ;;  %688 = vpow2.f32 %v338_v17  ;;  %v273_v19 = vmul.f32 %v1002_v1, %v208_v8  ;;  %v372_v22 = vmul.f32 1.442695, %v270_v7  ;;  %v274_v23 = vmul.f32 %v1002_v1, %v209_v12  ;;  %v213_v28 = vld [vmem:[%s995_s6 + $0x170] sm:$0xff] }
  0x58   : > { %v665_v36 = vpop.eup %664  ;;  %432 = vst [vmem:[%s1052_s21 + $0x40] sm:$0xff] %v663_v32  ;;  %690 = vpow2.f32 %v340_v21  ;;  %v374_v26 = vmul.f32 1.442695, %v271_v11  ;;  %v275_v27 = vmul.f32 %v1002_v1, %v210_v16  ;;  %v376_v30 = vmul.f32 1.442695, %v272_v15  ;;  %v214_v32 = vld [vmem:[%s995_s6 + $0x178] sm:$0xff] }
  0x59   : > { %v667_v40 = vpop.eup %666  ;;  %433 = vst [vmem:[%s1052_s21 + $0x48] sm:$0xff] %v665_v36  ;;  %692 = vpow2.f32 %v342_v25  ;;  %v276_v31 = vmul.f32 %v1002_v1, %v211_v20  ;;  %v378_v34 = vmul.f32 1.442695, %v273_v19  ;;  %v277_v35 = vmul.f32 %v1002_v1, %v212_v24  ;;  %v215_v36 = vld [vmem:[%s995_s6 + $0x180] sm:$0xff] }
  0x5a   : > { %v669_v44 = vpop.eup %668  ;;  %434 = vst [vmem:[%s1052_s21 + $0x50] sm:$0xff] %v667_v40  ;;  %694 = vpow2.f32 %v344_v29  ;;  %v380_v38 = vmul.f32 1.442695, %v274_v23  ;;  %v278_v39 = vmul.f32 %v1002_v1, %v213_v28  ;;  %v216_v40 = vld [vmem:[%s995_s6 + $0x188] sm:$0xff]  ;;  %v382_v42 = vmul.f32 1.442695, %v275_v27 }
  0x5b   : > { %v671_v48 = vpop.eup %670  ;;  %435 = vst [vmem:[%s1052_s21 + $0x58] sm:$0xff] %v669_v44  ;;  %696 = vpow2.f32 %v346_v33  ;;  %v279_v43 = vmul.f32 %v1002_v1, %v214_v32  ;;  %v217_v44 = vld [vmem:[%s995_s6 + $0x190] sm:$0xff]  ;;  %v384_v46 = vmul.f32 1.442695, %v276_v31  ;;  %v280_v47 = vmul.f32 %v1002_v1, %v215_v36 }
  0x5c   : > { %v673_v52 = vpop.eup %672  ;;  %436 = vst [vmem:[%s1052_s21 + $0x60] sm:$0xff] %v671_v48  ;;  %698 = vpow2.f32 %v348_v37  ;;  %v218_v48 = vld [vmem:[%s995_s6 + $0x198] sm:$0xff]  ;;  %v386_v50 = vmul.f32 1.442695, %v277_v35  ;;  %v281_v51 = vmul.f32 %v1002_v1, %v216_v40  ;;  %v388_v54 = vmul.f32 1.442695, %v278_v39 }
  0x5d   : > { %v675_v56 = vpop.eup %674  ;;  %437 = vst [vmem:[%s1052_s21 + $0x68] sm:$0xff] %v673_v52  ;;  %700 = vpow2.f32 %v350_v41  ;;  %v219_v52 = vld [vmem:[%s995_s6 + $0x1a0] sm:$0xff]  ;;  %v282_v55 = vmul.f32 %v1002_v1, %v217_v44  ;;  %v390_v58 = vmul.f32 1.442695, %v279_v43  ;;  %v283_v59 = vmul.f32 %v1002_v1, %v218_v48 }
  0x5e   : > { %v677_v60 = vpop.eup %676  ;;  %438 = vst [vmem:[%s1052_s21 + $0x70] sm:$0xff] %v675_v56  ;;  %702 = vpow2.f32 %v352_v45  ;;  %v220_v56 = vld [vmem:[%s995_s6 + $0x1a8] sm:$0xff]  ;;  %v392_v62 = vmul.f32 1.442695, %v280_v47  ;;  %v284_v63 = vmul.f32 %v1002_v1, %v219_v52  ;;  %v394_v3 = vmul.f32 1.442695, %v281_v51 }
  0x5f   : > { %v679_v0 = vpop.eup %678  ;;  %439 = vst [vmem:[%s1052_s21 + $0x78] sm:$0xff] %v677_v60  ;;  %704 = vpow2.f32 %v354_v49  ;;  %v221_v60 = vld [vmem:[%s995_s6 + $0x1b0] sm:$0xff]  ;;  %v285_v4 = vmul.f32 %v1002_v1, %v220_v56  ;;  %v396_v7 = vmul.f32 1.442695, %v282_v55  ;;  %v398_v11 = vmul.f32 1.442695, %v283_v59 }
  0x60   : > { %v681_v5 = vpop.eup %680  ;;  %440 = vst [vmem:[%s1052_s21 + $0x80] sm:$0xff] %v679_v0  ;;  %706 = vpow2.f32 %v356_v53  ;;  %v222_v0 = vld [vmem:[%s995_s6 + $0x1b8] sm:$0xff]  ;;  %v286_v8 = vmul.f32 %v1002_v1, %v221_v60  ;;  %v400_v15 = vmul.f32 1.442695, %v284_v63 }
  0x61   : > { %v683_v9 = vpop.eup %682  ;;  %441 = vst [vmem:[%s1052_s21 + $0x88] sm:$0xff] %v681_v5  ;;  %708 = vpow2.f32 %v358_v57  ;;  %v223_v5 = vld [vmem:[%s995_s6 + $0x1c0] sm:$0xff]  ;;  %v287_v12 = vmul.f32 %v1002_v1, %v222_v0  ;;  %v402_v19 = vmul.f32 1.442695, %v285_v4 }
  0x62   : > { %v685_v13 = vpop.eup %684  ;;  %442 = vst [vmem:[%s1052_s21 + $0x90] sm:$0xff] %v683_v9  ;;  %710 = vpow2.f32 %v360_v61  ;;  %v224_v9 = vld [vmem:[%s995_s6 + $0x1c8] sm:$0xff]  ;;  %v288_v16 = vmul.f32 %v1002_v1, %v223_v5  ;;  %v404_v23 = vmul.f32 1.442695, %v286_v8 }
  0x63   : > { %v687_v17 = vpop.eup %686  ;;  %443 = vst [vmem:[%s1052_s21 + $0x98] sm:$0xff] %v685_v13  ;;  %712 = vpow2.f32 %v362_v2  ;;  %v225_v13 = vld [vmem:[%s995_s6 + $0x1d0] sm:$0xff]  ;;  %v289_v20 = vmul.f32 %v1002_v1, %v224_v9  ;;  %v406_v27 = vmul.f32 1.442695, %v287_v12 }
  0x64   : > { %v689_v21 = vpop.eup %688  ;;  %444 = vst [vmem:[%s1052_s21 + $0xa0] sm:$0xff] %v687_v17  ;;  %714 = vpow2.f32 %v364_v6  ;;  %v226_v17 = vld [vmem:[%s995_s6 + $0x1d8] sm:$0xff]  ;;  %v290_v24 = vmul.f32 %v1002_v1, %v225_v13  ;;  %v408_v31 = vmul.f32 1.442695, %v288_v16 }
  0x65   : > { %v691_v25 = vpop.eup %690  ;;  %445 = vst [vmem:[%s1052_s21 + $0xa8] sm:$0xff] %v689_v21  ;;  %716 = vpow2.f32 %v366_v10  ;;  %v227_v21 = vld [vmem:[%s995_s6 + $0x1e0] sm:$0xff]  ;;  %v291_v28 = vmul.f32 %v1002_v1, %v226_v17  ;;  %v410_v35 = vmul.f32 1.442695, %v289_v20 }
  0x66   : > { %v693_v29 = vpop.eup %692  ;;  %446 = vst [vmem:[%s1052_s21 + $0xb0] sm:$0xff] %v691_v25  ;;  %718 = vpow2.f32 %v368_v14  ;;  %v228_v25 = vld [vmem:[%s995_s6 + $0x1e8] sm:$0xff]  ;;  %v292_v32 = vmul.f32 %v1002_v1, %v227_v21 }
  0x67   : > { %v695_v33 = vpop.eup %694  ;;  %447 = vst [vmem:[%s1052_s21 + $0xb8] sm:$0xff] %v693_v29  ;;  %720 = vpow2.f32 %v370_v18  ;;  %v229_v29 = vld [vmem:[%s995_s6 + $0x1f0] sm:$0xff]  ;;  %v293_v36 = vmul.f32 %v1002_v1, %v228_v25 }
  0x68   : > { %v697_v37 = vpop.eup %696  ;;  %448 = vst [vmem:[%s1052_s21 + $0xc0] sm:$0xff] %v695_v33  ;;  %722 = vpow2.f32 %v372_v22  ;;  %v230_v33 = vld [vmem:[%s995_s6 + $0x1f8] sm:$0xff]  ;;  %v294_v39 = vmul.f32 %v1002_v1, %v229_v29  ;;  %v416_v44 = vmul.f32 1.442695, %v292_v32 }
  0x69   : > { %v699_v41 = vpop.eup %698  ;;  %449 = vst [vmem:[%s1052_s21 + $0xc8] sm:$0xff] %v697_v37  ;;  %724 = vpow2.f32 %v374_v26 }
  0x6a   : > { %v701_v45 = vpop.eup %700  ;;  %450 = vst [vmem:[%s1052_s21 + $0xd0] sm:$0xff] %v699_v41  ;;  %726 = vpow2.f32 %v376_v30  ;;  %v414_v41 = vmul.f32 1.442695, %v291_v28  ;;  %v420_v48 = vmul.f32 1.442695, %v294_v39 }
  0x6b   : > { %v703_v49 = vpop.eup %702  ;;  %451 = vst [vmem:[%s1052_s21 + $0xd8] sm:$0xff] %v701_v45  ;;  %728 = vpow2.f32 %v378_v34 }
  0x6c   : > { %v705_v53 = vpop.eup %704  ;;  %452 = vst [vmem:[%s1052_s21 + $0xe0] sm:$0xff] %v703_v49  ;;  %730 = vpow2.f32 %v380_v38  ;;  %v412_v38 = vmul.f32 1.442695, %v290_v24 }
  0x6d   : > { %v707_v57 = vpop.eup %706  ;;  %453 = vst [vmem:[%s1052_s21 + $0xe8] sm:$0xff] %v705_v53  ;;  %732 = vpow2.f32 %v382_v42  ;;  %v295_v42 = vmul.f32 %v1002_v1, %v230_v33 }
  0x6e   : > { %v709_v61 = vpop.eup %708  ;;  %454 = vst [vmem:[%s1052_s21 + $0xf0] sm:$0xff] %v707_v57  ;;  %734 = vpow2.f32 %v384_v46  ;;  %v418_v46 = vmul.f32 1.442695, %v293_v36 }
  0x6f   : > { %v711_v2 = vpop.eup %710  ;;  %455 = vst [vmem:[%s1052_s21 + $0xf8] sm:$0xff] %v709_v61  ;;  %736 = vpow2.f32 %v386_v50  ;;  %v422_v1 = vmul.f32 1.442695, %v295_v42 }
  0x70   : > { %v713_v6 = vpop.eup %712  ;;  %456 = vst [vmem:[%s1052_s21 + $0x100] sm:$0xff] %v711_v2  ;;  %738 = vpow2.f32 %v388_v54 }
  0x71   : > { %v715_v10 = vpop.eup %714  ;;  %457 = vst [vmem:[%s1052_s21 + $0x108] sm:$0xff] %v713_v6  ;;  %740 = vpow2.f32 %v390_v58 }
  0x72   : > { %v717_v14 = vpop.eup %716  ;;  %458 = vst [vmem:[%s1052_s21 + $0x110] sm:$0xff] %v715_v10  ;;  %742 = vpow2.f32 %v392_v62 }
  0x73   : > { %v719_v18 = vpop.eup %718  ;;  %459 = vst [vmem:[%s1052_s21 + $0x118] sm:$0xff] %v717_v14  ;;  %744 = vpow2.f32 %v394_v3 }
  0x74   : > { %v721_v22 = vpop.eup %720  ;;  %460 = vst [vmem:[%s1052_s21 + $0x120] sm:$0xff] %v719_v18  ;;  %746 = vpow2.f32 %v396_v7 }
  0x75   : > { %v723_v26 = vpop.eup %722  ;;  %461 = vst [vmem:[%s1052_s21 + $0x128] sm:$0xff] %v721_v22  ;;  %748 = vpow2.f32 %v398_v11 }
  0x76   : > { %v725_v30 = vpop.eup %724  ;;  %462 = vst [vmem:[%s1052_s21 + $0x130] sm:$0xff] %v723_v26  ;;  %750 = vpow2.f32 %v400_v15 }
  0x77   : > { %v727_v34 = vpop.eup %726  ;;  %463 = vst [vmem:[%s1052_s21 + $0x138] sm:$0xff] %v725_v30  ;;  %752 = vpow2.f32 %v402_v19 }
  0x78   : > { %v729_v37 = vpop.eup %728  ;;  %464 = vst [vmem:[%s1052_s21 + $0x140] sm:$0xff] %v727_v34  ;;  %754 = vpow2.f32 %v404_v23 }
  0x79   : > { %v731_v40 = vpop.eup %730  ;;  %465 = vst [vmem:[%s1052_s21 + $0x148] sm:$0xff] %v729_v37  ;;  %756 = vpow2.f32 %v406_v27 }
  0x7a   : > { %v733_v43 = vpop.eup %732  ;;  %466 = vst [vmem:[%s1052_s21 + $0x150] sm:$0xff] %v731_v40  ;;  %758 = vpow2.f32 %v408_v31 }
  0x7b   : > { %v735_v45 = vpop.eup %734  ;;  %467 = vst [vmem:[%s1052_s21 + $0x158] sm:$0xff] %v733_v43  ;;  %760 = vpow2.f32 %v410_v35 }
  0x7c   : > { %v737_v47 = vpop.eup %736  ;;  %468 = vst [vmem:[%s1052_s21 + $0x160] sm:$0xff] %v735_v45  ;;  %762 = vpow2.f32 %v412_v38 }
  0x7d   : > { %v739_v49 = vpop.eup %738  ;;  %469 = vst [vmem:[%s1052_s21 + $0x168] sm:$0xff] %v737_v47  ;;  %764 = vpow2.f32 %v414_v41 }
  0x7e   : > { %v741_v50 = vpop.eup %740  ;;  %470 = vst [vmem:[%s1052_s21 + $0x170] sm:$0xff] %v739_v49  ;;  %766 = vpow2.f32 %v416_v44 }
  0x7f   : > { %v743_v51 = vpop.eup %742  ;;  %471 = vst [vmem:[%s1052_s21 + $0x178] sm:$0xff] %v741_v50  ;;  %768 = vpow2.f32 %v418_v46 }
  0x80   : > { %v745_v52 = vpop.eup %744  ;;  %472 = vst [vmem:[%s1052_s21 + $0x180] sm:$0xff] %v743_v51  ;;  %770 = vpow2.f32 %v420_v48 }
  0x81   : > { %v747_v53 = vpop.eup %746  ;;  %473 = vst [vmem:[%s1052_s21 + $0x188] sm:$0xff] %v745_v52  ;;  %772 = vpow2.f32 %v422_v1 }
  0x82   : > { %v749_v54 = vpop.eup %748  ;;  %474 = vst [vmem:[%s1052_s21 + $0x190] sm:$0xff] %v747_v53 }
  0x83   : > { %v751_v55 = vpop.eup %750  ;;  %475 = vst [vmem:[%s1052_s21 + $0x198] sm:$0xff] %v749_v54 }
  0x84   : > { %v753_v56 = vpop.eup %752  ;;  %476 = vst [vmem:[%s1052_s21 + $0x1a0] sm:$0xff] %v751_v55 }
  0x85   : > { %v755_v57 = vpop.eup %754  ;;  %477 = vst [vmem:[%s1052_s21 + $0x1a8] sm:$0xff] %v753_v56 }
  0x86   : > { %v757_v58 = vpop.eup %756  ;;  %478 = vst [vmem:[%s1052_s21 + $0x1b0] sm:$0xff] %v755_v57 }
  0x87   : > { %v759_v59 = vpop.eup %758  ;;  %479 = vst [vmem:[%s1052_s21 + $0x1b8] sm:$0xff] %v757_v58 }
  0x88   : > { %v761_v60 = vpop.eup %760  ;;  %480 = vst [vmem:[%s1052_s21 + $0x1c0] sm:$0xff] %v759_v59 }
  0x89   : > { %v763_v61 = vpop.eup %762  ;;  %481 = vst [vmem:[%s1052_s21 + $0x1c8] sm:$0xff] %v761_v60 }
  0x8a   : > { %v765_v62 = vpop.eup %764  ;;  %482 = vst [vmem:[%s1052_s21 + $0x1d0] sm:$0xff] %v763_v61 }
  0x8b   : > { %v767_v63 = vpop.eup %766  ;;  %483 = vst [vmem:[%s1052_s21 + $0x1d8] sm:$0xff] %v765_v62 }
  0x8c   : > { %v769_v0 = vpop.eup %768  ;;  %484 = vst [vmem:[%s1052_s21 + $0x1e0] sm:$0xff] %v767_v63 }
  0x8d   : > { %v771_v2 = vpop.eup %770  ;;  %485 = vst [vmem:[%s1052_s21 + $0x1e8] sm:$0xff] %v769_v0 }
  0x8e   : > { %v773_v3 = vpop.eup %772  ;;  %486 = vst [vmem:[%s1052_s21 + $0x1f0] sm:$0xff] %v771_v2 }
  0x8f   : > { %487 = vst [vmem:[%s1052_s21 + $0x1f8] sm:$0xff] %v773_v3 }
  0x90   : > { %815 = shalt.err (!%p812_p10)
}
  0x91   : > { %s816_s18 = scalar_lea.hbm %s1201_s8, 8192  ;;  %s820_s25 = scalar_lea.hbm %s1251_s2, 16384 }
  0x92   : > { %p817_p0 = scmp.ne.s32.totalorder %s1201_s8, %s816_s18  ;;  %p821_p1 = scmp.lt.s32.totalorder %s1201_s8, %s1251_s2 }
  0x93   : > { %p822_p3 = scmp.lt.s32.totalorder %s820_s25, %s816_s18 }
  0x94   : > { %p818_p2 = pnand %p817_p0, %p1260_p12 }
  0x95   : > { %p823_p6 = por %p822_p3, %p821_p1 }
  0x96   : > { %p819_p9 = pneg %p818_p2 }
  0x98   : > { %p824_p11 = pnand %p823_p6, %p819_p9 }
  0x9a   : > { %827 = shalt.err (!%p824_p11)
}
  0x9b   : > { %s872_s30 = smov 1024   ;;  %s873_s6 = smov 64  }
  0x9c   : > { %598 = dma.vmem_to_hbm [thread:$0]  (%p1260_p12), %s1203_s4, 8192, %s1201_s8, %s489_s0, %s872_s30, %s872_s30, %s873_s6  }
  0x9d PF: > { %s518_s29 = sand.u32 1, %s854_s11   ;;  %p1261_p13 = scmp.ne.s32.totalorder %s1257_s23, 0 }
  0x9e   : > { %p1262_p4 = scmp.ge.s32.totalorder %s866_s14, 2  ;;  %s519_s21 = scalar_lea.sflag [#allocation5], %s518_s29 }
  0xa0   : > { %p605_p5 = pnand %p1262_p4, %p1261_p13 }
  0xa2   : > { %p606_p7 = pneg %p605_p5 }
  0xa4   : > { %849 = dma.done.wait (%p606_p7), %s519_s21, 8192  }
  0xa5   : > { %851 = vsyncadd (%p606_p7), %s519_s21, 4294959104  ;;  %p16_p8 = scmp.ge.s32.totalorder %s917_s16, 4   ;;  %s1263_s11 = smov %s858_s12 }
  0xa6   : > { %s1264_s12 = smov %s862_s13  ;;  %s1265_s13 = smov %s929_s19 }
  0xa7   : > { %s1266_s14 = smov %s917_s16  ;;  %18 = sbr.rel (!%p16_p8) target bundleno = 7 (0x7), region = 73 }
  0xac   :  { %524 = vsyncpa [#allocation4], 1 }
  0xad   :  { %526 = vsyncpa [#allocation4 + $0x1], 1 }
  0xae   :  { %527 = vsyncpa [#allocation5], 1 }
  0xaf   :  { %529 = vsyncpa [#allocation5 + $0x1], 1 }

</bundles_post_ra>
